<compile_context>
chip_gen: v7x
topology: tpu7x:2x2x1
jax: 0.10.0
libtpu: 0.0.40
codegen_flags: <defaults>
</compile_context>

<pallas_src>
import functools

import jax
import jax.numpy as jnp
from jax import lax
from jax.experimental import pallas as pl
from jax.experimental.pallas import tpu as pltpu


def _cdiv(a, b):
    return (a + b - 1) // b


def _round_up(a, b):
    return _cdiv(a, b) * b


def _focal_loss_kernel(logits_ref, targets_ref, out_ref, acc_ref, *,
                       alpha, gamma, n_total, tile_n):
    p = pl.program_id(0)          # parallel (per-core) axis
    j = pl.program_id(1)          # reduction axis
    steps = pl.num_programs(1)

    @pl.when(j == 0)
    def _():
        acc_ref[...] = jnp.zeros_like(acc_ref)

    x = logits_ref[...]                               # (tile_n, C_pad) native dtype
    t = targets_ref[...]                              # (tile_n, 1) int32

    # One-hot lane mask: (1, C_pad) lane iota broadcast against (tile_n, 1)
    # targets (no full-tile iota materialization).
    col = lax.broadcasted_iota(jnp.int32, (1, x.shape[-1]), 1)
    onehot = col == t                                 # (tile_n, C_pad) bool

    # Row max + target-logit gather in the native dtype (bf16-friendly).
    m = jnp.max(x, axis=-1, keepdims=True)            # (tile_n, 1)
    x_t = jnp.sum(jnp.where(onehot, x, 0), axis=-1, keepdims=True)  # exact: 1 hot

    # f32 only for the exp / sum / log path (numerically stable logsumexp).
    xm = (x - m).astype(jnp.float32)                  # (tile_n, C_pad) f32
    ssum = jnp.sum(jnp.exp(xm), axis=-1, keepdims=True)   # >= 1
    lse_rel = jnp.log(ssum)                           # logsumexp(x) - m

    # Per-row CE; clamp >= 0 so pt <= 1 (avoids NaN in the focal term).
    ce = jnp.maximum(
        lse_rel + (m.astype(jnp.float32) - x_t.astype(jnp.float32)), 0.0)
    pt = jnp.exp(-ce)
    base = 1.0 - pt

    g = float(gamma)
    if g == int(g) and g >= 0:
        # Integer gamma (default gamma=2): cheap VPU multiplies, no pow.
        mod = jnp.ones_like(base)
        for _ in range(int(g)):
            mod = mod * base
    else:
        mod = jnp.power(jnp.maximum(base, 0.0), g)

    focal = jnp.float32(alpha) * mod * ce             # (tile_n, 1)

    # Mask padded tail rows (global row index >= n_total contributes 0).
    row0 = (p * steps + j) * tile_n
    rows = row0 + lax.broadcasted_iota(jnp.int32, (tile_n, 1), 0)
    focal = jnp.where(rows < n_total, focal, 0.0)

    acc_ref[...] += jnp.sum(focal)

    @pl.when(j == steps - 1)
    def _():
        # Lane-dense (8,128) output block filled with this slice's partial sum.
        out_ref[...] = jnp.zeros_like(out_ref) + acc_ref[...]


def focal_loss(logits, targets, *, alpha=1.0, gamma=2.0, weights=None,
               tile_n=None, num_parallel=1):
    """logits: (N, C) float (f32 or bf16), targets: (N,) int.

    Returns the scalar mean focal loss (weights=None path of the torch module).
    num_parallel=1 for v5e/v6e (single TensorCore); pass 2 on v7x.
    """
    if weights is not None:
        # TODO(synk): per-class weights (cross_entropy weight=) not implemented.
        raise NotImplementedError("per-class weights are not supported")

    N, C = logits.shape
    P = int(num_parallel)
    itemsize = jnp.dtype(logits.dtype).itemsize

    # Lane-dense class axis.
    C_pad = _round_up(C, 128)

    # --- Tile sizing -------------------------------------------------------
    # ~6 MiB logits block (per-step overhead ~0.35us -> >=90% of HBM roofline
    # on v5e/v6e/v7x), re-budgeted per dtype because the kernel upcasts the
    # tile to f32 (exp path).  Hard VMEM cap chosen to fit v7x (64 MiB phys).
    target_block_bytes = 6 * 1024 * 1024
    vmem_budget = 44 * 1024 * 1024
    # Per-row cost: double-buffered native block + ~2 full-tile f32 temps
    # (upcast / exp) + lane-padded (tile_n,1) int32 targets (double-buffered).
    per_row_bytes = 2 * C_pad * itemsize + 2 * C_pad * 4 + 2 * 128 * 4
    if 8 * per_row_bytes > vmem_budget:
        # TODO(synk): add a C-tiled streaming-logsumexp path for very large
        # class counts; the class axis is currently never tiled.
        raise NotImplementedError(
            f"num_classes={C} too large for the un-tiled class axis")

    if tile_n is None:
        cap_blk = (target_block_bytes // (C_pad * itemsize)) // 8 * 8
        cap_vmem = (vmem_budget // per_row_bytes) // 8 * 8
        cap_rows = max(8, min(2048, cap_blk, cap_vmem))
        want_rows = max(8, _round_up(_cdiv(N, P), 8))
        tile_n = min(cap_rows, want_rows)
    tile_n = int(tile_n)
    assert tile_n > 0 and tile_n % 8 == 0, "tile_n must be a positive multiple of 8"

    num_tiles = _cdiv(N, tile_n)
    steps = max(1, _cdiv(num_tiles, P))
    N_pad = P * steps * tile_n

    # Explicit scoped-VMEM limit matching the actual footprint.
    vmem_need = (2 * tile_n * C_pad * itemsize      # double-buffered logits
                 + 2 * tile_n * C_pad * 4           # f32 upcast / exp temps
                 + 2 * tile_n * 128 * 4             # targets (lane-padded)
                 + 4 * 8 * 128 * 4                  # output block + acc
                 + (2 << 20))                       # headroom
    vmem_limit = int(min(max(vmem_need, 32 << 20), 56 << 20))

    # Pad inputs. Padded classes get a huge negative (zero weight in logsumexp,
    # never a target); padded rows are masked inside the kernel.
    logits_p = logits
    if C_pad > C:
        neg = float(jnp.finfo(logits.dtype).min)
        logits_p = jnp.pad(logits_p, ((0, 0), (0, C_pad - C)), constant_values=neg)
    if N_pad > N:
        logits_p = jnp.pad(logits_p, ((0, N_pad - N), (0, 0)))

    targets_p = targets.astype(jnp.int32).reshape(N, 1)
    if N_pad > N:
        targets_p = jnp.pad(targets_p, ((0, N_pad - N), (0, 0)))

    kernel = functools.partial(
        _focal_loss_kernel, alpha=float(alpha), gamma=float(gamma),
        n_total=N, tile_n=tile_n)

    cost = pl.CostEstimate(
        flops=6 * N_pad * C_pad,
        transcendentals=N_pad * (C_pad + 2),
        bytes_accessed=N_pad * C_pad * itemsize + N_pad * 4 + P * 8 * 128 * 4,
    )

    out = pl.pallas_call(
        kernel,
        out_shape=jax.ShapeDtypeStruct((P * 8, 128), jnp.float32),
        grid_spec=pltpu.PrefetchScalarGridSpec(
            num_scalar_prefetch=0,
            grid=(P, steps),
            in_specs=[
                pl.BlockSpec((tile_n, C_pad), lambda p, j: (p * steps + j, 0)),
                pl.BlockSpec((tile_n, 1), lambda p, j: (p * steps + j, 0)),
            ],
            out_specs=pl.BlockSpec((8, 128), lambda p, j: (p, 0)),
            scratch_shapes=[pltpu.VMEM((1, 1), jnp.float32)],
        ),
        compiler_params=pltpu.CompilerParams(
            dimension_semantics=("parallel", "arbitrary"),
            vmem_limit_bytes=vmem_limit),
        cost_estimate=cost,
    )(logits_p, targets_p)

    # Each parallel slice filled its own (8,128) block with its partial sum.
    partials = out[::8, 0]                     # (P,)
    return jnp.sum(partials) / jnp.float32(N)


def _focal_loss_ref(logits, targets, alpha=1.0, gamma=2.0):
    """Pure-JAX reference matching torch semantics (weights=None)."""
    logp = jax.nn.log_softmax(logits.astype(jnp.float32), axis=-1)
    ce = -jnp.take_along_axis(logp, targets[:, None].astype(jnp.int32), axis=-1)[:, 0]
    pt = jnp.exp(-ce)
    return jnp.mean(alpha * (1.0 - pt) ** gamma * ce)


if __name__ == "__main__":
    key = jax.random.PRNGKey(0)
    k_logits, k_targets = jax.random.split(key)

    # Small (batch, num_classes) shapes consistent with the module.
    N, C = 8, 32
    logits = jax.random.normal(k_logits, (N, C), dtype=jnp.float32)
    targets = jax.random.randint(k_targets, (N,), 0, C, dtype=jnp.int32)

    loss = jax.block_until_ready(focal_loss(logits, targets, alpha=1.0, gamma=2.0))
    ref = _focal_loss_ref(logits, targets, alpha=1.0, gamma=2.0)
    assert jnp.allclose(loss, ref, rtol=1e-5, atol=1e-5), (loss, ref)

    # bf16 input path (kernel math stays f32 for the exp/log part).
    loss_bf16 = jax.block_until_ready(focal_loss(logits.astype(jnp.bfloat16), targets))
    ref_bf16 = _focal_loss_ref(logits.astype(jnp.bfloat16).astype(jnp.float32), targets)
    assert jnp.allclose(loss_bf16, ref_bf16, rtol=5e-2, atol=5e-2), (loss_bf16, ref_bf16)

    # Multi-step grid + padded classes + padded/masked tail rows + two parallel
    # slices (v7x-style), all exercised at a still-small size.
    N2, C2 = 200, 33
    logits2 = jax.random.normal(k_logits, (N2, C2), dtype=jnp.float32)
    targets2 = jax.random.randint(k_targets, (N2,), 0, C2, dtype=jnp.int32)
    loss2 = jax.block_until_ready(
        focal_loss(logits2, targets2, tile_n=32, num_parallel=2))
    ref2 = _focal_loss_ref(logits2, targets2)
    assert jnp.allclose(loss2, ref2, rtol=1e-4, atol=1e-5), (loss2, ref2)

    print("KERNEL_OK")
</pallas_src>

<mosaic_0001>
module attributes {stable_mosaic.version = 11 : i64} {
  func.func @_focal_loss_kernel(%arg0: i32, %arg1: i32, %arg2: memref<8x128xf32, #tpu.memory_space<vmem>>, %arg3: memref<8x1xi32, #tpu.memory_space<vmem>>, %arg4: memref<8x128xf32, #tpu.memory_space<vmem>>, %arg5: memref<1x1xf32, #tpu.memory_space<vmem>>) attributes {dimension_semantics = [#tpu.dimension_semantics<parallel>, #tpu.dimension_semantics<arbitrary>], iteration_bounds = array<i64: 1, 1>, scalar_prefetch = 0 : i64, scratch_operands = 1 : i64, tpu.core_type = #tpu.core_type<tc>, window_params = [{transform_indices = @transform_0, window_bounds = array<i64: 8, 128>}, {transform_indices = @transform_1, window_bounds = array<i64: 8, 1>}, {transform_indices = @transform_2, window_bounds = array<i64: 8, 128>}]} {
    %c0_i32 = arith.constant 0 : i32
    %0 = arith.cmpi eq, %arg1, %c0_i32 : i32
    %1 = arith.extui %0 : i1 to i32
    %c0_i32_0 = arith.constant 0 : i32
    %2 = arith.cmpi ne, %1, %c0_i32_0 : i32
    scf.if %2 {
      %cst_21 = arith.constant 0.000000e+00 : f32
      %58 = vector.broadcast %cst_21 : f32 to vector<1x1xf32>
      %c0_22 = arith.constant 0 : index
      %c0_23 = arith.constant 0 : index
      %59 = vector.load %arg5[%c0_22, %c0_23] : memref<1x1xf32, #tpu.memory_space<vmem>>, vector<1x1xf32>
      tpu.vector_store %arg5[%c0_22, %c0_23], %58 {strides = array<i32>} : memref<1x1xf32, #tpu.memory_space<vmem>>, vector<1x1xf32>,
    } else {
    }
    %c0 = arith.constant 0 : index
    %c0_1 = arith.constant 0 : index
    %3 = vector.load %arg2[%c0, %c0_1] : memref<8x128xf32, #tpu.memory_space<vmem>>, vector<8x128xf32>
    %c0_2 = arith.constant 0 : index
    %c0_3 = arith.constant 0 : index
    %4 = vector.load %arg3[%c0_2, %c0_3] : memref<8x1xi32, #tpu.memory_space<vmem>>, vector<8x1xi32>
    %5 = tpu.iota {dimensions = array<i32: 1>} : vector<1x128xi32>
    %6 = vector.broadcast %5 : vector<1x128xi32> to vector<8x128xi32>
    %7 = vector.broadcast %4 : vector<8x1xi32> to vector<8x128xi32>
    %8 = arith.cmpi eq, %6, %7 : vector<8x128xi32>
    %cst = arith.constant dense<0xFF800000> : vector<8xf32>
    %9 = vector.multi_reduction <maximumf>, %3, %cst [1] : vector<8x128xf32> to vector<8xf32>
    %10 = vector.shape_cast %9 : vector<8xf32> to vector<8x1xf32>
    %c0_i32_4 = arith.constant 0 : i32
    %11 = arith.sitofp %c0_i32_4 : i32 to f32
    %12 = vector.broadcast %11 : f32 to vector<8x128xf32>
    %13 = arith.select %8, %3, %12 : vector<8x128xi1>, vector<8x128xf32>
    %cst_5 = arith.constant dense<0.000000e+00> : vector<8xf32>
    %14 = vector.multi_reduction <add>, %13, %cst_5 [1] : vector<8x128xf32> to vector<8xf32>
    %15 = vector.shape_cast %14 : vector<8xf32> to vector<8x1xf32>
    %16 = vector.broadcast %10 : vector<8x1xf32> to vector<8x128xf32>
    %17 = arith.subf %3, %16 : vector<8x128xf32>
    %18 = math.exp %17 : vector<8x128xf32>
    %cst_6 = arith.constant dense<0.000000e+00> : vector<8xf32>
    %19 = vector.multi_reduction <add>, %18, %cst_6 [1] : vector<8x128xf32> to vector<8xf32>
    %20 = vector.shape_cast %19 : vector<8xf32> to vector<8x1xf32>
    %21 = math.log %20 : vector<8x1xf32>
    %22 = arith.subf %10, %15 : vector<8x1xf32>
    %23 = arith.addf %21, %22 : vector<8x1xf32>
    %cst_7 = arith.constant 0.000000e+00 : f32
    %24 = vector.broadcast %cst_7 : f32 to vector<8x1xf32>
    %25 = arith.maximumf %23, %24 : vector<8x1xf32>
    %cst_8 = arith.constant 0.000000e+00 : f32
    %26 = vector.broadcast %cst_8 : f32 to vector<8x1xf32>
    %27 = arith.subf %26, %25 : vector<8x1xf32>
    %28 = math.exp %27 : vector<8x1xf32>
    %cst_9 = arith.constant 1.000000e+00 : f32
    %29 = vector.broadcast %cst_9 : f32 to vector<8x1xf32>
    %30 = arith.subf %29, %28 : vector<8x1xf32>
    %cst_10 = arith.constant 1.000000e+00 : f32
    %31 = vector.broadcast %cst_10 : f32 to vector<8x1xf32>
    %32 = arith.mulf %31, %30 : vector<8x1xf32>
    %33 = arith.mulf %32, %30 : vector<8x1xf32>
    %cst_11 = arith.constant 1.000000e+00 : f32
    %34 = vector.broadcast %cst_11 : f32 to vector<8x1xf32>
    %35 = arith.mulf %34, %33 : vector<8x1xf32>
    %36 = arith.mulf %35, %25 : vector<8x1xf32>
    %c1_i32 = arith.constant 1 : i32
    %37 = arith.muli %arg0, %c1_i32 : i32
    %38 = arith.addi %37, %arg1 : i32
    %c8_i32 = arith.constant 8 : i32
    %39 = arith.muli %38, %c8_i32 : i32
    %40 = tpu.iota {dimensions = array<i32: 0>} : vector<8x1xi32>
    %41 = vector.broadcast %39 : i32 to vector<8x1xi32>
    %42 = arith.addi %41, %40 : vector<8x1xi32>
    %c8_i32_12 = arith.constant 8 : i32
    %43 = vector.broadcast %c8_i32_12 : i32 to vector<8x1xi32>
    %44 = arith.cmpi slt, %42, %43 : vector<8x1xi32>
    %cst_13 = arith.constant 0.000000e+00 : f32
    %45 = vector.broadcast %cst_13 : f32 to vector<8x1xf32>
    %46 = arith.select %44, %36, %45 : vector<8x1xi1>, vector<8x1xf32>
    %c0_14 = arith.constant 0 : index
    %c0_15 = arith.constant 0 : index
    %47 = vector.load %arg5[%c0_14, %c0_15] : memref<1x1xf32, #tpu.memory_space<vmem>>, vector<1x1xf32>
    %48 = vector.shape_cast %46 : vector<8x1xf32> to vector<1x8x1xf32>
    %cst_16 = arith.constant dense<0.000000e+00> : vector<1xf32>
    %49 = vector.multi_reduction <add>, %48, %cst_16 [1, 2] : vector<1x8x1xf32> to vector<1xf32>
    %50 = vector.shape_cast %49 : vector<1xf32> to vector<1x1x1xf32>
    %51 = vector.extract %50[0, 0, 0] : f32 from vector<1x1x1xf32>
    %52 = vector.broadcast %51 : f32 to vector<1x1xf32>
    %53 = arith.addf %47, %52 : vector<1x1xf32>
    %c0_17 = arith.constant 0 : index
    %c0_18 = arith.constant 0 : index
    %54 = vector.load %arg5[%c0_17, %c0_18] : memref<1x1xf32, #tpu.memory_space<vmem>>, vector<1x1xf32>
    tpu.vector_store %arg5[%c0_17, %c0_18], %53 {strides = array<i32>} : memref<1x1xf32, #tpu.memory_space<vmem>>, vector<1x1xf32>,
    %c0_i32_19 = arith.constant 0 : i32
    %55 = arith.cmpi eq, %arg1, %c0_i32_19 : i32
    %56 = arith.extui %55 : i1 to i32
    %c0_i32_20 = arith.constant 0 : i32
    %57 = arith.cmpi ne, %56, %c0_i32_20 : i32
    scf.if %57 {
      %cst_21 = arith.constant 0.000000e+00 : f32
      %58 = vector.broadcast %cst_21 : f32 to vector<8x128xf32>
      %c0_22 = arith.constant 0 : index
      %c0_23 = arith.constant 0 : index
      %59 = vector.load %arg5[%c0_22, %c0_23] : memref<1x1xf32, #tpu.memory_space<vmem>>, vector<1x1xf32>
      %60 = vector.broadcast %59 : vector<1x1xf32> to vector<8x128xf32>
      %61 = arith.addf %58, %60 : vector<8x128xf32>
      %c0_24 = arith.constant 0 : index
      %c0_25 = arith.constant 0 : index
      %62 = vector.load %arg4[%c0_24, %c0_25] : memref<8x128xf32, #tpu.memory_space<vmem>>, vector<8x128xf32>
      tpu.vector_store %arg4[%c0_24, %c0_25], %61 {strides = array<i32>} : memref<8x128xf32, #tpu.memory_space<vmem>>, vector<8x128xf32>,
    } else {
    }
    return
  }
  func.func @transform_0(%arg0: i32, %arg1: i32) -> (i32, i32) {
    %c1_i32 = arith.constant 1 : i32
    %0 = arith.muli %arg0, %c1_i32 : i32
    %1 = arith.addi %0, %arg1 : i32
    %c0_i32 = arith.constant 0 : i32
    %c0_i32_0 = arith.constant 0 : i32
    return %1, %c0_i32 : i32, i32
  }
  func.func @transform_1(%arg0: i32, %arg1: i32) -> (i32, i32) {
    %c1_i32 = arith.constant 1 : i32
    %0 = arith.muli %arg0, %c1_i32 : i32
    %1 = arith.addi %0, %arg1 : i32
    %c0_i32 = arith.constant 0 : i32
    %c0_i32_0 = arith.constant 0 : i32
    return %1, %c0_i32 : i32, i32
  }
  func.func @transform_2(%arg0: i32, %arg1: i32) -> (i32, i32) {
    %c0_i32 = arith.constant 0 : i32
    %c0_i32_0 = arith.constant 0 : i32
    return %arg0, %c0_i32 : i32, i32
  }
}

</mosaic_0001>

<bundles_post_ra>
// kernel: tpu_custom_call.1
= control target key start
LH: loop header
LB: loop body
LE: loop exit
PB: predicated region body
PF: predicated region fallthrough
CT: control target
= control target key end

     0   :  { %s220_s0 = inlined_call_operand.vmem [shape: f32[8,128], index: 0, kind: input, shape index: {}]   ;;  %s221_s1 = inlined_call_operand.vmem [shape: s32[8,1], index: 1, kind: input, shape index: {}]   ;;  %s222_s2 = inlined_call_operand.hbm [shape: f32[8,128], index: 2, kind: output, shape index: {}]  }
   0x1   :  { %v52_v0 = vld [vmem:[%s220_s0] sm:$0xff] }
   0x2   :  { %7 = vsyncpa [#allocation4], 0  ;;  %60 = vmax.xlane.f32.xlu0 %v52_v0  ;;  %v184_v1 = vmov 0   ;;  %v53_v2 = vld [vmem:[%s221_s1] sm:$0xff]  ;;  %v54_v6 = vlaneseq  ;;  %vm90_vm1 = vcmask 7168   ;;  %vm50_vm2 = vcmask 0  }
   0x3   :  { %153 = vset.pattern.permute.xlu1 %v184_v1  ;;  %152 = vset.pattern.permute.xlu0 %v184_v1  ;;  %v185_v25 = vmov 0.0   ;;  %s186_s1 = smov [#allocation3]  }
   0x4   :  { %v55_v7 = vand.u32 127, %v54_v6  ;;  %51 = vst.msk [vmem:[#allocation2] sm:$0x1] %vm50_vm2, %v185_v25  ;;  %s126_s13 = sshll.u32 %s186_s1, 4  ;;  %s127_s13 = int_to_ptr.vmem [resolvable:$true] %s126_s13 }
   0x5   :  { %s160_s14 = scalar_lea.vmem %s127_s13, 128  ;;  %p165_p1 = scmp.lt.s32.totalorder %s127_s13, %s127_s13 }
   0x6   :  { %p161_p0 = scmp.ne.s32.totalorder %s127_s13, %s160_s14  ;;  %p166_p2 = scmp.lt.s32.totalorder %s160_s14, %s160_s14 }
   0x8   :  { %p167_p3 = por %p166_p2, %p165_p1 }
   0xa   :  { %p168_p4 = pnand %p167_p3, %p161_p0 }
   0xb   :  { %v89_v33 = vld [vmem:[#allocation2] sm:$0x1] }
  0x18   :  { %57 = vperm.xlu0 %152, %v53_v2  }
  0x8f   :  { %v61_v3 = vpop.xlane.xlu0 %60 }
  0x90   :  { %v65_v4 = vsub.f32 %v52_v0, %v61_v3 }
  0x92   :  { %v66_v5 = vmul.f32 1.442695, %v65_v4 }
  0x94   :  { %154 = vpow2.f32 %v66_v5 }
  0x97   :  { %v58_v8 = vpop.permute.xlu0 %57 }
  0x98   :  { %vm59_vm0 = vcmp.eq.s32.totalorder %v55_v7, %v58_v8 }
  0x99   :  { %v62_v10 = vsel %vm59_vm0, %v52_v0, 0.0 }
  0x9e   :  { %v155_v9 = vpop.eup %154 }
  0x9f   :  { %68 = vadd.xlane.f32.xlu1 %v155_v9 }
  0xa3   :  { %63 = vadd.xlane.f32.xlu1 %v62_v10 }
 0x12c   :  { %v69_v11 = vpop.xlane.xlu1 %68 }
 0x12d   :  { %156 = vlog2.f32 %v69_v11 }
 0x130   :  { %v64_v12 = vpop.xlane.xlu1 %63 }
 0x131   :  { %v72_v15 = vsub.f32 %v61_v3, %v64_v12 }
 0x137   :  { %v157_v13 = vpop.eup %156 }
 0x138   :  { %v71_v14 = vmul.f32 0.6931472, %v157_v13 }
 0x13a   :  { %v73_v16 = vadd.f32 %v72_v15, %v71_v14 }
 0x13c   :  { %v74_v17 = vmax.f32 %v73_v16, 0.0 }
 0x13e   :  { %v75_v18 = vsub.f32 0.0, %v74_v17 }
 0x140   :  { %v76_v19 = vmul.f32 1.442695, %v75_v18 }
 0x142   :  { %158 = vpow2.f32 %v76_v19 }
 0x14c   :  { %v159_v20 = vpop.eup %158 }
 0x14d   :  { %v78_v21 = vsub.f32 1.0, %v159_v20 }
 0x14f   :  { %v79_v22 = vmul.f32 %v78_v21, %v78_v21 }
 0x151   :  { %v80_v23 = vmul.f32 %v79_v22, %v74_v17 }
 0x153   :  { %v91_v24 = vsel %vm90_vm1, %v80_v23, 0.0 }
 0x154   :  { %92 = vadd.xlane.f32.xlu1 %v91_v24 }
 0x1e1   :  { %v93_v26 = vpop.xlane.xlu1 %92 }
 0x1e2   :  { %v94_v27 = vrot.slane %v93_v26, 4 }
 0x1e4   :  { %v95_v28 = vadd.f32 %v94_v27, %v93_v26 }
 0x1e6   :  { %v96_v29 = vrot.slane %v95_v28, 2 }
 0x1e8   :  { %v97_v30 = vadd.f32 %v96_v29, %v95_v28 }
 0x1ea   :  { %v98_v31 = vrot.slane %v97_v30, 1 }
 0x1ec   :  { %v99_v32 = vadd.f32 %v98_v31, %v97_v30 }
 0x1ee   :  { %147 = vpush %v99_v32 }
 0x21f   :  { %s148_s0 = spop %147 }
 0x220   :  { %v101_v34 = vstv %s148_s0 }
 0x221   :  { %v102_v35 = vadd.f32 %v101_v34, %v89_v33 }
 0x223   :  { %104 = vst.msk [vmem:[#allocation2] sm:$0x1] %vm50_vm2, %v102_v35 }
 0x22a   :  { %v146_v36 = vld [vmem:[#allocation2] ss:$0 sm:$0xff] }
 0x22b   :  { %115 = vperm.xlu1 %153, %v146_v36  }
 0x2aa   :  { %v116_v37 = vpop.permute.xlu1 %115 }
 0x2ab   :  { %119 = vst [vmem:[#allocation3] sm:$0xff] %v116_v37 }
 0x2ac   :  { %171 = shalt.err (!%p168_p4)
}
 0x2ad   :  { %s172_s17 = scalar_lea.hbm %s222_s2, 128 }
 0x2ae   :  { %p173_p5 = scmp.ne.s32.totalorder %s222_s2, %s172_s17  ;;  %p176_p6 = scmp.lt.u32.totalorder %s172_s17, %s222_s2 }
 0x2b0   :  { %p178_p7 = pnand %p176_p6, %p173_p5 }
 0x2b2   :  { %181 = shalt.err (!%p178_p7)
}
 0x2b3   :  { %129 = dma.vmem_to_hbm [thread:$0]  %s127_s13, 128, %s222_s2, [#allocation4]  }
 0x2b4   :  { %182 = dma.done.wait [#allocation4], 128  }
 0x2b5   :  { %183 = vsyncadd [#allocation4], 4294967168 }
 0x2b6   :  { %133 = vsyncpa [#allocation4], 1 }

</bundles_post_ra>
